<compile_context>
chip_gen: v7x
topology: tpu7x:2x2x1
jax: 0.10.0
libtpu: 0.0.40
codegen_flags: <defaults>
</compile_context>

<pallas_src>
import functools

import jax
import jax.numpy as jnp
from jax.experimental import pallas as pl
from jax.experimental.pallas import tpu as pltpu


# fc3 output-column tile: lane-dense (multiple of 128); 384x256 bf16 = 192 KB
# per streamed weight tile.
_TN = 256


def _fcnet_kernel(x1_ref, x2_ref,
                  w1t_ref, b1_ref,
                  w2t_ref, b2_ref,
                  w3t_ref, b3_ref,
                  y1_ref, y2_ref, y3_ref,
                  h1_ref, h2_ref):
    O1 = y1_ref.shape[1]

    # fc1 / fc2 + ReLU: computed once on the first grid step.  h1/h2 are kept
    # resident in bf16 VMEM scratch (persists across grid steps) to feed the
    # fc3 N-tiles; y1/y2 written exactly once.
    @pl.when(pl.program_id(0) == 0)
    def _():
        h1 = jnp.dot(x1_ref[...].astype(jnp.bfloat16), w1t_ref[...],
                     preferred_element_type=jnp.float32)
        h1 = jnp.maximum(h1 + b1_ref[...], 0.0)          # bias + ReLU in f32 (VPU)
        y1_ref[...] = h1.astype(y1_ref.dtype)
        h1_ref[...] = h1.astype(h1_ref.dtype)

        h2 = jnp.dot(x2_ref[...].astype(jnp.bfloat16), w2t_ref[...],
                     preferred_element_type=jnp.float32)
        h2 = jnp.maximum(h2 + b2_ref[...], 0.0)
        y2_ref[...] = h2.astype(y2_ref.dtype)
        h2_ref[...] = h2.astype(h2_ref.dtype)

    # fc3 for this output-column tile.  The concat([h1, h2], dim=1) is realized
    # inside the reduction: two dots against static slices of the streamed
    # (O1+O2, TN) weight tile -- no concat buffer, no VMEM round trip.
    h3 = jnp.dot(h1_ref[...], w3t_ref[:O1, :],
                 preferred_element_type=jnp.float32)
    h3 = h3 + jnp.dot(h2_ref[...], w3t_ref[O1:, :],
                      preferred_element_type=jnp.float32)
    h3 = jnp.maximum(h3 + b3_ref[...], 0.0)
    y3_ref[...] = h3.astype(y3_ref.dtype)


def _round_up(n, m):
    return (n + m - 1) // m * m


def prepare_params(params, weight_dtype=jnp.bfloat16):
    """One-time parameter prep (do NOT call per forward): transpose torch-layout
    weights to (in, out), pad fc3 out dim to a multiple of 128, cast weights to
    bf16; biases stay f32 as (1, O) rows."""
    O1 = params["w1"].shape[0]
    O2 = params["w2"].shape[0]
    O3 = params["w3"].shape[0]
    O3p = _round_up(O3, 128)

    w1t = jnp.asarray(params["w1"]).T.astype(weight_dtype)          # (D1, O1)
    w2t = jnp.asarray(params["w2"]).T.astype(weight_dtype)          # (D2, O2)
    w3t = jnp.asarray(params["w3"]).T.astype(weight_dtype)          # (O1+O2, O3)
    w3t = jnp.pad(w3t, ((0, 0), (0, O3p - O3)))                     # (O1+O2, O3p)

    b1 = jnp.asarray(params["b1"]).reshape(1, O1).astype(jnp.float32)
    b2 = jnp.asarray(params["b2"]).reshape(1, O2).astype(jnp.float32)
    b3 = jnp.pad(jnp.asarray(params["b3"]).astype(jnp.float32),
                 (0, O3p - O3)).reshape(1, O3p)

    prepped = dict(w1t=w1t, b1=b1, w2t=w2t, b2=b2, w3t=w3t, b3=b3)
    return prepped, O3


@functools.partial(jax.jit, static_argnames=("o3",))
def fcnet_forward(x1, x2, w1t, b1, w2t, b2, w3t, b3, *, o3):
    """Run FullyConnectedNet.forward as one Pallas call on pre-prepped weights."""
    B, D1 = x1.shape
    _, D2 = x2.shape
    O1 = w1t.shape[1]
    O2 = w2t.shape[1]
    C = O1 + O2
    O3p = w3t.shape[1]
    assert O3p % _TN == 0, "fc3 padded width must tile by _TN"
    n_tiles = O3p // _TN

    flops = 2 * B * (D1 * O1 + D2 * O2 + C * O3p)
    bytes_accessed = (
        x1.size * x1.dtype.itemsize + x2.size * x2.dtype.itemsize
        + w1t.size * w1t.dtype.itemsize + w2t.size * w2t.dtype.itemsize
        + w3t.size * w3t.dtype.itemsize
        + (b1.size + b2.size + b3.size) * 4
        + B * (O1 + O2 + O3p) * 4)

    y1, y2, y3p = pl.pallas_call(
        _fcnet_kernel,
        out_shape=(
            jax.ShapeDtypeStruct((B, O1), jnp.float32),
            jax.ShapeDtypeStruct((B, O2), jnp.float32),
            jax.ShapeDtypeStruct((B, O3p), jnp.float32),
        ),
        grid=(n_tiles,),
        in_specs=[
            pl.BlockSpec((B, D1), lambda j: (0, 0)),    # x1 (resident)
            pl.BlockSpec((B, D2), lambda j: (0, 0)),    # x2 (resident)
            pl.BlockSpec((D1, O1), lambda j: (0, 0)),   # w1^T (resident)
            pl.BlockSpec((1, O1), lambda j: (0, 0)),    # b1
            pl.BlockSpec((D2, O2), lambda j: (0, 0)),   # w2^T (resident)
            pl.BlockSpec((1, O2), lambda j: (0, 0)),    # b2
            pl.BlockSpec((C, _TN), lambda j: (0, j)),   # w3^T streamed N-tile
            pl.BlockSpec((1, _TN), lambda j: (0, j)),   # b3 tile
        ],
        out_specs=(
            pl.BlockSpec((B, O1), lambda j: (0, 0)),    # y1 (written on step 0)
            pl.BlockSpec((B, O2), lambda j: (0, 0)),    # y2 (written on step 0)
            pl.BlockSpec((B, _TN), lambda j: (0, j)),   # y3 per N-tile
        ),
        scratch_shapes=[
            pltpu.VMEM((B, O1), jnp.bfloat16),          # h1 (persists across grid)
            pltpu.VMEM((B, O2), jnp.bfloat16),          # h2 (persists across grid)
        ],
        compiler_params=pltpu.CompilerParams(
            dimension_semantics=("arbitrary",),
            vmem_limit_bytes=8 << 20),
        cost_estimate=pl.CostEstimate(flops=flops, transcendentals=0,
                                      bytes_accessed=bytes_accessed),
    )(x1, x2, w1t, b1, w2t, b2, w3t, b3)

    # Consumers that can ignore the zero tail could take y3p directly and skip
    # this slice; kept here to match the module's (B, 1000) contract.
    return y1, y2, y3p[:, :o3]


def _ref_forward(x1, x2, p):
    h1 = jax.nn.relu(x1 @ p["w1"].T + p["b1"])
    h2 = jax.nn.relu(x2 @ p["w2"].T + p["b2"])
    h3 = jax.nn.relu(jnp.concatenate([h1, h2], axis=1) @ p["w3"].T + p["b3"])
    return h1, h2, h3


if __name__ == "__main__":
    # Module config: input_sizes=(128, 256), output_sizes=(128, 256), fc3 -> 1000
    B = 8
    D1, D2 = 128, 256
    O1, O2 = 128, 256
    O3 = 1000

    key = jax.random.PRNGKey(0)
    k = jax.random.split(key, 8)
    x1 = jax.random.normal(k[0], (B, D1), dtype=jnp.float32)
    x2 = jax.random.normal(k[1], (B, D2), dtype=jnp.float32)

    # Deterministic parameter init (torch Linear shapes: W (out, in), b (out,))
    params = {
        "w1": jax.random.normal(k[2], (O1, D1), dtype=jnp.float32) * 0.05,
        "b1": jax.random.normal(k[3], (O1,), dtype=jnp.float32) * 0.05,
        "w2": jax.random.normal(k[4], (O2, D2), dtype=jnp.float32) * 0.05,
        "b2": jax.random.normal(k[5], (O2,), dtype=jnp.float32) * 0.05,
        "w3": jax.random.normal(k[6], (O3, O1 + O2), dtype=jnp.float32) * 0.05,
        "b3": jax.random.normal(k[7], (O3,), dtype=jnp.float32) * 0.05,
    }

    # One-time prep (transpose / pad / bf16-cast) — not on the per-call path.
    prepped, o3 = prepare_params(params)

    y1, y2, y3 = fcnet_forward(x1, x2,
                               prepped["w1t"], prepped["b1"],
                               prepped["w2t"], prepped["b2"],
                               prepped["w3t"], prepped["b3"],
                               o3=o3)
    jax.block_until_ready((y1, y2, y3))

    r1, r2, r3 = _ref_forward(x1, x2, params)
    assert y1.shape == (B, O1) and y2.shape == (B, O2) and y3.shape == (B, O3)
    # bf16 weights -> loosened tolerance vs. the f32 reference.
    assert jnp.allclose(y1, r1, atol=5e-2, rtol=5e-2)
    assert jnp.allclose(y2, r2, atol=5e-2, rtol=5e-2)
    assert jnp.allclose(y3, r3, atol=5e-2, rtol=5e-2)

    print("KERNEL_OK")
</pallas_src>

<mosaic_0001>
module attributes {stable_mosaic.version = 11 : i64} {
  func.func @_fcnet_kernel(%arg0: i32, %arg1: memref<8x128xf32, #tpu.memory_space<vmem>>, %arg2: memref<8x256xf32, #tpu.memory_space<vmem>>, %arg3: memref<128x128xbf16, #tpu.memory_space<vmem>>, %arg4: memref<1x128xf32, #tpu.memory_space<vmem>>, %arg5: memref<256x256xbf16, #tpu.memory_space<vmem>>, %arg6: memref<1x256xf32, #tpu.memory_space<vmem>>, %arg7: memref<384x256xbf16, #tpu.memory_space<vmem>>, %arg8: memref<1x256xf32, #tpu.memory_space<vmem>>, %arg9: memref<8x128xf32, #tpu.memory_space<vmem>>, %arg10: memref<8x256xf32, #tpu.memory_space<vmem>>, %arg11: memref<8x256xf32, #tpu.memory_space<vmem>>, %arg12: memref<8x128xbf16, #tpu.memory_space<vmem>>, %arg13: memref<8x256xbf16, #tpu.memory_space<vmem>>) attributes {dimension_semantics = [#tpu.dimension_semantics<arbitrary>], iteration_bounds = array<i64: 4>, scalar_prefetch = 0 : i64, scratch_operands = 2 : i64, tpu.core_type = #tpu.core_type<tc>, window_params = [{pipeline_mode = #tpu.pipeline_mode<synchronous>, transform_indices = @transform_0, window_bounds = array<i64: 8, 128>}, {pipeline_mode = #tpu.pipeline_mode<synchronous>, transform_indices = @transform_1, window_bounds = array<i64: 8, 256>}, {pipeline_mode = #tpu.pipeline_mode<synchronous>, transform_indices = @transform_2, window_bounds = array<i64: 128, 128>}, {pipeline_mode = #tpu.pipeline_mode<synchronous>, transform_indices = @transform_3, window_bounds = array<i64: 1, 128>}, {pipeline_mode = #tpu.pipeline_mode<synchronous>, transform_indices = @transform_4, window_bounds = array<i64: 256, 256>}, {pipeline_mode = #tpu.pipeline_mode<synchronous>, transform_indices = @transform_5, window_bounds = array<i64: 1, 256>}, {transform_indices = @transform_6, window_bounds = array<i64: 384, 256>}, {transform_indices = @transform_7, window_bounds = array<i64: 1, 256>}, {pipeline_mode = #tpu.pipeline_mode<synchronous>, transform_indices = @transform_8, window_bounds = array<i64: 8, 128>}, {pipeline_mode = #tpu.pipeline_mode<synchronous>, transform_indices = @transform_9, window_bounds = array<i64: 8, 256>}, {transform_indices = @transform_10, window_bounds = array<i64: 8, 256>}]} {
    %c0_i32 = arith.constant 0 : i32
    %0 = arith.cmpi eq, %arg0, %c0_i32 : i32
    %1 = arith.extui %0 : i1 to i32
    %c0_i32_0 = arith.constant 0 : i32
    %2 = arith.cmpi ne, %1, %c0_i32_0 : i32
    scf.if %2 {
      %c0_13 = arith.constant 0 : index
      %c0_14 = arith.constant 0 : index
      %16 = vector.load %arg1[%c0_13, %c0_14] : memref<8x128xf32, #tpu.memory_space<vmem>>, vector<8x128xf32>
      %17 = arith.truncf %16 : vector<8x128xf32> to vector<8x128xbf16>
      %c0_15 = arith.constant 0 : index
      %c0_16 = arith.constant 0 : index
      %18 = vector.load %arg3[%c0_15, %c0_16] : memref<128x128xbf16, #tpu.memory_space<vmem>>, vector<128x128xbf16>
      %cst_17 = arith.constant dense<0.000000e+00> : vector<8x128xf32>
      %19 = tpu.matmul %17, %18, %cst_17 {dimension_numbers = #tpu.dot_dimension_numbers<[1], [0], [0], [1], [0, 0, 1, 1], [], []>} : vector<8x128xbf16>, vector<128x128xbf16>, vector<8x128xf32> -> vector<8x128xf32>
      %c0_18 = arith.constant 0 : index
      %c0_19 = arith.constant 0 : index
      %20 = vector.load %arg4[%c0_18, %c0_19] : memref<1x128xf32, #tpu.memory_space<vmem>>, vector<1x128xf32>
      %21 = vector.broadcast %20 : vector<1x128xf32> to vector<8x128xf32>
      %22 = arith.addf %19, %21 : vector<8x128xf32>
      %cst_20 = arith.constant 0.000000e+00 : f32
      %23 = vector.broadcast %cst_20 : f32 to vector<8x128xf32>
      %24 = arith.maximumf %22, %23 : vector<8x128xf32>
      %c0_21 = arith.constant 0 : index
      %c0_22 = arith.constant 0 : index
      %25 = vector.load %arg9[%c0_21, %c0_22] : memref<8x128xf32, #tpu.memory_space<vmem>>, vector<8x128xf32>
      tpu.vector_store %arg9[%c0_21, %c0_22], %24 {strides = array<i32>} : memref<8x128xf32, #tpu.memory_space<vmem>>, vector<8x128xf32>,
      %26 = arith.truncf %24 : vector<8x128xf32> to vector<8x128xbf16>
      %c0_23 = arith.constant 0 : index
      %c0_24 = arith.constant 0 : index
      %27 = vector.load %arg12[%c0_23, %c0_24] : memref<8x128xbf16, #tpu.memory_space<vmem>>, vector<8x128xbf16>
      tpu.vector_store %arg12[%c0_23, %c0_24], %26 {strides = array<i32>} : memref<8x128xbf16, #tpu.memory_space<vmem>>, vector<8x128xbf16>,
      %c0_25 = arith.constant 0 : index
      %c0_26 = arith.constant 0 : index
      %28 = vector.load %arg2[%c0_25, %c0_26] : memref<8x256xf32, #tpu.memory_space<vmem>>, vector<8x256xf32>
      %29 = arith.truncf %28 : vector<8x256xf32> to vector<8x256xbf16>
      %c0_27 = arith.constant 0 : index
      %c0_28 = arith.constant 0 : index
      %30 = vector.load %arg5[%c0_27, %c0_28] : memref<256x256xbf16, #tpu.memory_space<vmem>>, vector<256x256xbf16>
      %cst_29 = arith.constant dense<0.000000e+00> : vector<8x256xf32>
      %31 = tpu.matmul %29, %30, %cst_29 {dimension_numbers = #tpu.dot_dimension_numbers<[1], [0], [0], [1], [0, 0, 1, 1], [], []>} : vector<8x256xbf16>, vector<256x256xbf16>, vector<8x256xf32> -> vector<8x256xf32>
      %c0_30 = arith.constant 0 : index
      %c0_31 = arith.constant 0 : index
      %32 = vector.load %arg6[%c0_30, %c0_31] : memref<1x256xf32, #tpu.memory_space<vmem>>, vector<1x256xf32>
      %33 = vector.broadcast %32 : vector<1x256xf32> to vector<8x256xf32>
      %34 = arith.addf %31, %33 : vector<8x256xf32>
      %cst_32 = arith.constant 0.000000e+00 : f32
      %35 = vector.broadcast %cst_32 : f32 to vector<8x256xf32>
      %36 = arith.maximumf %34, %35 : vector<8x256xf32>
      %c0_33 = arith.constant 0 : index
      %c0_34 = arith.constant 0 : index
      %37 = vector.load %arg10[%c0_33, %c0_34] : memref<8x256xf32, #tpu.memory_space<vmem>>, vector<8x256xf32>
      tpu.vector_store %arg10[%c0_33, %c0_34], %36 {strides = array<i32>} : memref<8x256xf32, #tpu.memory_space<vmem>>, vector<8x256xf32>,
      %38 = arith.truncf %36 : vector<8x256xf32> to vector<8x256xbf16>
      %c0_35 = arith.constant 0 : index
      %c0_36 = arith.constant 0 : index
      %39 = vector.load %arg13[%c0_35, %c0_36] : memref<8x256xbf16, #tpu.memory_space<vmem>>, vector<8x256xbf16>
      tpu.vector_store %arg13[%c0_35, %c0_36], %38 {strides = array<i32>} : memref<8x256xbf16, #tpu.memory_space<vmem>>, vector<8x256xbf16>,
    } else {
    }
    %c0 = arith.constant 0 : index
    %c0_1 = arith.constant 0 : index
    %3 = vector.load %arg12[%c0, %c0_1] : memref<8x128xbf16, #tpu.memory_space<vmem>>, vector<8x128xbf16>
    %c0_2 = arith.constant 0 : index
    %c0_3 = arith.constant 0 : index
    %4 = vector.load %arg7[%c0_2, %c0_3] : memref<384x256xbf16, #tpu.memory_space<vmem>>, vector<128x256xbf16>
    %cst = arith.constant dense<0.000000e+00> : vector<8x256xf32>
    %5 = tpu.matmul %3, %4, %cst {dimension_numbers = #tpu.dot_dimension_numbers<[1], [0], [0], [1], [0, 0, 1, 1], [], []>} : vector<8x128xbf16>, vector<128x256xbf16>, vector<8x256xf32> -> vector<8x256xf32>
    %c0_4 = arith.constant 0 : index
    %c0_5 = arith.constant 0 : index
    %6 = vector.load %arg13[%c0_4, %c0_5] : memref<8x256xbf16, #tpu.memory_space<vmem>>, vector<8x256xbf16>
    %c128 = arith.constant 128 : index
    %c0_6 = arith.constant 0 : index
    %7 = vector.load %arg7[%c128, %c0_6] : memref<384x256xbf16, #tpu.memory_space<vmem>>, vector<256x256xbf16>
    %cst_7 = arith.constant dense<0.000000e+00> : vector<8x256xf32>
    %8 = tpu.matmul %6, %7, %cst_7 {dimension_numbers = #tpu.dot_dimension_numbers<[1], [0], [0], [1], [0, 0, 1, 1], [], []>} : vector<8x256xbf16>, vector<256x256xbf16>, vector<8x256xf32> -> vector<8x256xf32>
    %9 = arith.addf %5, %8 : vector<8x256xf32>
    %c0_8 = arith.constant 0 : index
    %c0_9 = arith.constant 0 : index
    %10 = vector.load %arg8[%c0_8, %c0_9] : memref<1x256xf32, #tpu.memory_space<vmem>>, vector<1x256xf32>
    %11 = vector.broadcast %10 : vector<1x256xf32> to vector<8x256xf32>
    %12 = arith.addf %9, %11 : vector<8x256xf32>
    %cst_10 = arith.constant 0.000000e+00 : f32
    %13 = vector.broadcast %cst_10 : f32 to vector<8x256xf32>
    %14 = arith.maximumf %12, %13 : vector<8x256xf32>
    %c0_11 = arith.constant 0 : index
    %c0_12 = arith.constant 0 : index
    %15 = vector.load %arg11[%c0_11, %c0_12] : memref<8x256xf32, #tpu.memory_space<vmem>>, vector<8x256xf32>
    tpu.vector_store %arg11[%c0_11, %c0_12], %14 {strides = array<i32>} : memref<8x256xf32, #tpu.memory_space<vmem>>, vector<8x256xf32>,
    return
  }
  func.func @transform_0(%arg0: i32) -> (i32, i32) {
    %c0_i32 = arith.constant 0 : i32
    %c0_i32_0 = arith.constant 0 : i32
    %c0_i32_1 = arith.constant 0 : i32
    return %c0_i32, %c0_i32_0 : i32, i32
  }
  func.func @transform_1(%arg0: i32) -> (i32, i32) {
    %c0_i32 = arith.constant 0 : i32
    %c0_i32_0 = arith.constant 0 : i32
    %c0_i32_1 = arith.constant 0 : i32
    return %c0_i32, %c0_i32_0 : i32, i32
  }
  func.func @transform_2(%arg0: i32) -> (i32, i32) {
    %c0_i32 = arith.constant 0 : i32
    %c0_i32_0 = arith.constant 0 : i32
    %c0_i32_1 = arith.constant 0 : i32
    return %c0_i32, %c0_i32_0 : i32, i32
  }
  func.func @transform_3(%arg0: i32) -> (i32, i32) {
    %c0_i32 = arith.constant 0 : i32
    %c0_i32_0 = arith.constant 0 : i32
    %c0_i32_1 = arith.constant 0 : i32
    return %c0_i32, %c0_i32_0 : i32, i32
  }
  func.func @transform_4(%arg0: i32) -> (i32, i32) {
    %c0_i32 = arith.constant 0 : i32
    %c0_i32_0 = arith.constant 0 : i32
    %c0_i32_1 = arith.constant 0 : i32
    return %c0_i32, %c0_i32_0 : i32, i32
  }
  func.func @transform_5(%arg0: i32) -> (i32, i32) {
    %c0_i32 = arith.constant 0 : i32
    %c0_i32_0 = arith.constant 0 : i32
    %c0_i32_1 = arith.constant 0 : i32
    return %c0_i32, %c0_i32_0 : i32, i32
  }
  func.func @transform_6(%arg0: i32) -> (i32, i32) {
    %c0_i32 = arith.constant 0 : i32
    %c0_i32_0 = arith.constant 0 : i32
    return %c0_i32, %arg0 : i32, i32
  }
  func.func @transform_7(%arg0: i32) -> (i32, i32) {
    %c0_i32 = arith.constant 0 : i32
    %c0_i32_0 = arith.constant 0 : i32
    return %c0_i32, %arg0 : i32, i32
  }
  func.func @transform_8(%arg0: i32) -> (i32, i32) {
    %c0_i32 = arith.constant 0 : i32
    %c0_i32_0 = arith.constant 0 : i32
    %c0_i32_1 = arith.constant 0 : i32
    return %c0_i32, %c0_i32_0 : i32, i32
  }
  func.func @transform_9(%arg0: i32) -> (i32, i32) {
    %c0_i32 = arith.constant 0 : i32
    %c0_i32_0 = arith.constant 0 : i32
    %c0_i32_1 = arith.constant 0 : i32
    return %c0_i32, %c0_i32_0 : i32, i32
  }
  func.func @transform_10(%arg0: i32) -> (i32, i32) {
    %c0_i32 = arith.constant 0 : i32
    %c0_i32_0 = arith.constant 0 : i32
    return %c0_i32, %arg0 : i32, i32
  }
}

</mosaic_0001>

<bundles_post_ra>
// kernel: fcnet_forward.1
= control target key start
LH: loop header
LB: loop body
LE: loop exit
PB: predicated region body
PF: predicated region fallthrough
CT: control target
= control target key end

     0   :  { %s2553_s0 = inlined_call_operand.hbm [shape: f32[8,128], index: 0, kind: input, shape index: {}]   ;;  %s2554_s1 = inlined_call_operand.hbm [shape: f32[8,256], index: 1, kind: input, shape index: {}]   ;;  %s2555_s2 = inlined_call_operand.hbm [shape: bf16[128,128], index: 2, kind: input, shape index: {}]   ;;  %s2556_s3 = inlined_call_operand.vmem [shape: f32[1,128], index: 3, kind: input, shape index: {}]   ;;  %s2557_s4 = inlined_call_operand.hbm [shape: bf16[256,256], index: 4, kind: input, shape index: {}]   ;;  %s2558_s5 = inlined_call_operand.vmem [shape: f32[1,256], index: 5, kind: input, shape index: {}]   ;;  %s2559_s6 = inlined_call_operand.hbm [shape: bf16[384,1024], index: 6, kind: input, shape index: {}]   ;;  %s2560_s7 = inlined_call_operand.vmem [shape: f32[1,1024], index: 7, kind: input, shape index: {}]   ;;  %s2561_s8 = inlined_call_operand.hbm [shape: f32[8,128], index: 8, kind: output, shape index: {0}]   ;;  %s2562_s9 = inlined_call_operand.hbm [shape: f32[8,256], index: 9, kind: output, shape index: {1}]   ;;  %s2563_s10 = inlined_call_operand.hbm [shape: f32[8,1024], index: 10, kind: output, shape index: {2}]  }
   0x1   :  { %2578 = sst [smem:[#allocation28_spill]] %s2553_s0 }
   0x2   :  { %2579 = sst [smem:[#allocation29_spill]] %s2554_s1 }
   0x3   :  { %2580 = sst [smem:[#allocation30_spill]] %s2562_s9 }
   0x4   :  { %2581 = sst [smem:[#allocation31_spill]] %s2563_s10 }
   0x5   :  { %16 = vsyncpa [#allocation5], 0 }
   0x6   :  { %17 = vsyncpa [#allocation8], 0 }
   0x7   :  { %18 = vsyncpa [#allocation11], 0 }
   0x8   :  { %19 = vsyncpa [#allocation6], 0 }
   0x9   :  { %20 = vsyncpa [#allocation15], 0  ;;  %s2145_s13 = smov 0   ;;  %s2147_s14 = smov 0  }
   0xa   :  { %s2149_s15 = smov 0   ;;  %s2151_s16 = smov 0  }
   0xb LB: > { %s2164_s17 = sadd.s32 4294967295, %s2072_s16   ;;  %s2566_s18 = sadd.s32 4294967294, %s2072_s16   ;;  %s2072_s16 = sphi %s2151_s16, %s2624_s16   ;;  %s2068_s15 = sphi %s2149_s15, %s2628_s15   ;;  %s2064_s14 = sphi %s2147_s14, %s2627_s14   ;;  %s2060_s13 = sphi %s2145_s13, %s2626_s13  }
   0xc   : > { %s2168_s19 = sadd.s32 1, %s2072_s16   ;;  %s159_s20 = sadd.s32 1, %s2068_s15 }
   0xd   : > { %2582 = sst [smem:[#allocation24_spill]] %s2168_s19  ;;  %s156_s21 = ssub.s32 %s2072_s16, %s2168_s19 }
   0xe   : > { %p166_p0 = scmp.ne.s32.totalorder %s2068_s15, %s2064_s14  ;;  %p157_p1 = scmp.eq.s32.totalorder %s156_s21, 0 }
   0xf   : > { %p167_p2 = scmp.eq.s32.totalorder %s2072_s16, 0  ;;  %p172_p3 = scmp.ne.s32.totalorder %s2064_s14, %s2060_s13 }
  0x10   : > { %p2564_p4 = scmp.eq.s32.totalorder %s2164_s17, 0  ;;  %p2565_p7 = scmp.eq.s32.totalorder %s2164_s17, 3 }
  0x11   : > { %s2179_s22 = scalar_select %p157_p1, %s2068_s15, %s159_s20  }
  0x12   : > { %p2181_p5 = por %p167_p2, %p166_p0  ;;  %p2187_p6 = por %p2564_p4, %p172_p3 }
  0x13   : > { %2583 = sst [smem:[#allocation25_spill]] %s2179_s22  ;;  %p270_p8 = scmp.eq.s32.totalorder %s2566_s18, 3 }
  0x14   : > { %s2585_s24 = scalar_select %p2187_p6, 1, 0 }
  0x15   : > { %p1402_p9 = scmp.ge.s32.totalorder %s2072_s16, 1  ;;  %p277_p10 = scmp.lt.s32.totalorder %s2072_s16, 5 }
  0x16   : > { %p2198_p11 = por %p2565_p7, %p166_p0  ;;  %p2202_p12 = por %p270_p8, %p172_p3 }
  0x17   : > { %p2206_p13 = pnand %p1402_p9, %p277_p10  ;;  %s2074_s28 = smov [#allocation4]  }
  0x18   : > { %s2586_s25 = scalar_select %p2198_p11, 1, 0 }
  0x19   : > { %s2588_s26 = scalar_select %p2202_p12, 1, 0 }
  0x1a   : > { %2587 = sst [smem:[#allocation26_spill]] %s2586_s25  ;;  %p1581_p2 = pneg %p2206_p13 }
  0x1b   : > { %2589 = sst [smem:[#allocation27_spill]] %s2588_s26  ;;  %s290_s29 = sshll.u32 %s2074_s28, 4  ;;  %s291_s29 = int_to_ptr.vmem [resolvable:$true] %s290_s29 }
  0x1c   : > { %s2590_s27 = scalar_select %p2206_p13, 1, 0 }
  0x1d   : > { %p1606_p4 = scmp.lt.s32.totalorder %s2072_s16, 4  ;;  %p2591_p0 = scmp.eq.s32.totalorder %s2164_s17, 0 }
  0x1e   : > { %s2075_s12 = smov [#allocation7]   ;;  %s2594_s0 = sld [smem:[#allocation28_spill]] }
  0x1f   : > { %p2216_p7 = pnand %p1581_p2, %p2591_p0  ;;  %p2222_p3 = pnand %p1606_p4, %p2181_p5 }
  0x20   : > { %s301_s13 = sshll.u32 %s2075_s12, 4  ;;  %s2226_s13 = int_to_ptr.vmem [resolvable:$true] %s301_s13 }
  0x21   : > { %s2593_s11 = scalar_select %p2222_p3, 1, 0 }
  0x22   : > { %p2236_p9 = pneg %p2216_p7 }
  0x24   : > { %s1792_s28 = scalar_lea.hbm %s2594_s0, 128 }
  0x25   : > { %p1793_p8 = scmp.ne.s32.totalorder %s2594_s0, %s1792_s28  ;;  %p1799_p10 = scmp.lt.u32.totalorder %s1792_s28, %s2594_s0 }
  0x27   : > { %p1795_p4 = pnand %p2236_p9, %p1793_p8 }
  0x29   : > { %p1796_p5 = pneg %p1795_p4 }
  0x2b   : > { %p1801_p2 = pnand %p1799_p10, %p1796_p5 }
  0x2d   : > { %1804 = shalt.err (!%p1801_p2)
}
  0x2e   : > { %s1805_s20 = scalar_lea.vmem %s291_s29, 128  ;;  %p1813_p11 = scmp.lt.s32.totalorder %s291_s29, %s291_s29 }
  0x2f   : > { %p1806_p0 = scmp.ne.s32.totalorder %s291_s29, %s1805_s20  ;;  %p1814_p6 = scmp.lt.s32.totalorder %s1805_s20, %s1805_s20 }
  0x31   : > { %p1808_p1 = pnand %p1806_p0, %p2236_p9  ;;  %p1815_p13 = por %p1814_p6, %p1813_p11 }
  0x33   : > { %p1809_p12 = pneg %p1808_p1 }
  0x35   : > { %p1816_p3 = pnand %p1815_p13, %p1809_p12 }
  0x37   : > { %1819 = shalt.err (!%p1816_p3)
}
  0x38   : > { %1584 = dma.hbm_to_vmem [thread:$0]  (!%p2216_p7), %s2594_s0, 128, %s291_s29, [#allocation5]  }
  0x39   : > { %s2596_s1 = sld [smem:[#allocation29_spill]] }
  0x3f   : > { %s1820_s28 = scalar_lea.hbm %s2596_s1, 256 }
  0x40   : > { %p1821_p1 = scmp.ne.s32.totalorder %s2596_s1, %s1820_s28  ;;  %p1827_p11 = scmp.lt.u32.totalorder %s1820_s28, %s2596_s1 }
  0x42   : > { %p1823_p8 = pnand %p1821_p1, %p2236_p9 }
  0x44   : > { %p1824_p6 = pneg %p1823_p8 }
  0x46   : > { %p1829_p12 = pnand %p1827_p11, %p1824_p6 }
  0x48   : > { %1832 = shalt.err (!%p1829_p12)
}
  0x49   : > { %s1833_s29 = scalar_lea.vmem %s2226_s13, 256  ;;  %p1841_p5 = scmp.lt.s32.totalorder %s2226_s13, %s2226_s13 }
  0x4a   : > { %p1834_p13 = scmp.ne.s32.totalorder %s2226_s13, %s1833_s29  ;;  %p1842_p10 = scmp.lt.s32.totalorder %s1833_s29, %s1833_s29 }
  0x4c   : > { %p1836_p3 = pnand %p1834_p13, %p2236_p9  ;;  %p1843_p2 = por %p1842_p10, %p1841_p5 }
  0x4e   : > { %p1837_p4 = pneg %p1836_p3 }
  0x50   : > { %p1844_p0 = pnand %p1843_p2, %p1837_p4 }
  0x52   : > { %1847 = shalt.err (!%p1844_p0)
}
  0x53   : > { %1587 = dma.hbm_to_vmem [thread:$0]  (!%p2216_p7), %s2596_s1, 256, %s2226_s13, [#allocation8]  }
  0x54   : > { %s2076_s18 = smov [#allocation9]   ;;  %s1848_s28 = scalar_lea.hbm %s2555_s2, 1024 }
  0x55   : > { %s311_s22 = sshll.u32 %s2076_s18, 4  ;;  %p1849_p1 = scmp.ne.s32.totalorder %s2555_s2, %s1848_s28  ;;  %s312_s22 = int_to_ptr.vmem [resolvable:$true] %s311_s22 }
  0x56   : > { %p1855_p11 = scmp.lt.u32.totalorder %s1848_s28, %s2555_s2 }
  0x57   : > { %p1851_p8 = pnand %p1849_p1, %p2236_p9 }
  0x59   : > { %p1852_p6 = pneg %p1851_p8 }
  0x5b   : > { %p1857_p12 = pnand %p1855_p11, %p1852_p6 }
  0x5d   : > { %1860 = shalt.err (!%p1857_p12)
}
  0x5e   : > { %s1861_s13 = scalar_lea.vmem %s312_s22, 1024  ;;  %p1869_p5 = scmp.lt.s32.totalorder %s312_s22, %s312_s22 }
  0x5f   : > { %p1862_p13 = scmp.ne.s32.totalorder %s312_s22, %s1861_s13  ;;  %p1870_p10 = scmp.lt.s32.totalorder %s1861_s13, %s1861_s13 }
  0x61   : > { %p1864_p3 = pnand %p1862_p13, %p2236_p9  ;;  %p1871_p2 = por %p1870_p10, %p1869_p5 }
  0x63   : > { %p1865_p4 = pneg %p1864_p3 }
  0x65   : > { %p1872_p0 = pnand %p1871_p2, %p1865_p4 }
  0x67   : > { %1875 = shalt.err (!%p1872_p0)
}
  0x68   : > { %s2077_s10 = smov 64   ;;  %s2078_s26 = smov 4  }
  0x69   : > { %1590 = dma.hbm_to_vmem [thread:$0]  (!%p2216_p7), %s2555_s2, 1024, %s312_s22, [#allocation8], %s2077_s10, %s2077_s10, %s2078_s26  }
  0x6a   : > { %s2079_s19 = smov [#allocation10]   ;;  %s344_s28 = sand.u32 1, %s2072_s16  }
  0x6b   : > { %s327_s21 = sshll.u32 %s2079_s19, 4  ;;  %s1876_s29 = scalar_lea.hbm %s2557_s4, 4096  ;;  %s328_s21 = int_to_ptr.vmem [resolvable:$true] %s327_s21 }
  0x6c   : > { %p1877_p1 = scmp.ne.s32.totalorder %s2557_s4, %s1876_s29  ;;  %p1883_p11 = scmp.lt.u32.totalorder %s1876_s29, %s2557_s4 }
  0x6e   : > { %p1879_p8 = pnand %p1877_p1, %p2236_p9 }
  0x70   : > { %p1880_p6 = pneg %p1879_p8 }
  0x72   : > { %p1885_p12 = pnand %p1883_p11, %p1880_p6 }
  0x74   : > { %1888 = shalt.err (!%p1885_p12)
}
  0x75   : > { %s1889_s22 = scalar_lea.vmem %s328_s21, 4096  ;;  %p1897_p5 = scmp.lt.s32.totalorder %s328_s21, %s328_s21 }
  0x76   : > { %p1890_p13 = scmp.ne.s32.totalorder %s328_s21, %s1889_s22  ;;  %p1898_p10 = scmp.lt.s32.totalorder %s1889_s22, %s1889_s22 }
  0x78   : > { %p1892_p3 = pnand %p1890_p13, %p2236_p9  ;;  %p1899_p2 = por %p1898_p10, %p1897_p5 }
  0x7a   : > { %p1893_p4 = pneg %p1892_p3 }
  0x7c   : > { %p1900_p0 = pnand %p1899_p2, %p1893_p4 }
  0x7e   : > { %1903 = shalt.err (!%p1900_p0)
}
  0x7f   : > { %s2080_s1 = smov 128   ;;  %s2081_s9 = smov 8  }
  0x80   : > { %1593 = dma.hbm_to_vmem [thread:$0]  (!%p2216_p7), %s2557_s4, 4096, %s328_s21, [#allocation11], %s2080_s1, %s2080_s1, %s2081_s9  }
  0x81   : > { %s346_s10 = sand.u32 1, %s2068_s15   ;;  %s1519_s0 = sshll.u32 %s2072_s16, 7 }
  0x82   : > { %s1551_s26 = smul.u32 384, %s346_s10  ;;  %s2320_s12 = scalar_lea.hbm %s2559_s6, %s1519_s0 }
  0x83   : > { %s2324_s29 = scalar_lea.sflag [#allocation5], %s344_s28  ;;  %s1904_s13 = scalar_lea.hbm %s2320_s12, 6144 }
  0x84   : > { %s348_s30 = scalar_lea.vmem [#allocation12], %s1551_s26  ;;  %p1905_p7 = scmp.ne.s32.totalorder %s2320_s12, %s1904_s13 }
  0x85   : > { %s355_s20 = sshll.u32 %s348_s30, 4  ;;  %p2597_p9 = scmp.ne.s32.totalorder %s2593_s11, 0  ;;  %s2322_s20 = int_to_ptr.vmem [resolvable:$true] %s355_s20 }
  0x86   : > { %s1909_s25 = scalar_lea.hbm %s2559_s6, 24576  ;;  %p1910_p11 = scmp.lt.u32.totalorder %s2320_s12, %s2559_s6 }
  0x87   : > { %p1906_p1 = pneg %p2597_p9  ;;  %p1911_p12 = scmp.lt.u32.totalorder %s1909_s25, %s1904_s13 }
  0x88   : > { %p1913_p3 = scmp.lt.u32.totalorder %s1904_s13, %s2320_s12 }
  0x89   : > { %p1907_p8 = pnand %p1906_p1, %p1905_p7  ;;  %p1912_p13 = por %p1911_p12, %p1910_p11 }
  0x8b   : > { %p1908_p6 = pneg %p1907_p8  ;;  %p1914_p4 = por %p1913_p3, %p1912_p13 }
  0x8d   : > { %p1915_p5 = pnand %p1914_p4, %p1908_p6 }
  0x8f   : > { %1918 = shalt.err (!%p1915_p5)
}
  0x90   : > { %s1919_s28 = scalar_lea.vmem %s2322_s20, 6144  ;;  %s2082_s26 = smov [#allocation12]  }
  0x91   : > { %p1920_p10 = scmp.ne.s32.totalorder %s2322_s20, %s1919_s28  ;;  %s1924_s0 = sshll.u32 %s2082_s26, 4  ;;  %s1925_s0 = int_to_ptr.vmem [resolvable:$false] %s1924_s0 }
  0x92   : > { %s1926_s18 = scalar_lea.vmem %s1925_s0, 12288  ;;  %p1927_p7 = scmp.lt.s32.totalorder %s2322_s20, %s1925_s0 }
  0x93   : > { %p1922_p2 = pnand %p1920_p10, %p1906_p1  ;;  %p1928_p8 = scmp.lt.s32.totalorder %s1926_s18, %s1919_s28 }
  0x95   : > { %p1923_p0 = pneg %p1922_p2  ;;  %p1929_p11 = por %p1928_p8, %p1927_p7 }
  0x97   : > { %p1930_p12 = pnand %p1929_p11, %p1923_p0 }
  0x99   : > { %1933 = shalt.err (!%p1930_p12)
}
  0x9a   : > { %s2083_s19 = smov 512   ;;  %p2598_p1 = scmp.ne.s32.totalorder %s2590_s27, 0 }
  0x9b   : > { %1597 = dma.hbm_to_vmem [thread:$0]  (!%p2597_p9), %s2320_s12, 6144, %s2322_s20, %s2324_s29, %s2083_s19, %s2080_s1, %s2081_s9  }
  0x9c   : > { %375 = sbr.rel (%p2598_p1) target bundleno = 769 (0x301), region = 52  ;;  %p2599_p6 = scmp.eq.s32.totalorder (!%p2598_p1), %s2164_s17, 0 }
  0xa3   : > { %2031 = dma.done.wait (%p2599_p6), [#allocation5], 128   ;;  %p2600_p13 = pmov %p2599_p6 }
  0xa4   : > { %p2601_p3 = pmov %p2599_p6 }
  0xa5   : > { %2033 = vsyncadd (%p2600_p13), [#allocation5], 4294967168 }
  0xa6   : > { %2035 = dma.done.wait (%p2601_p3), [#allocation8], 1280   ;;  %p2602_p4 = pmov %p2601_p3 }
  0xa7   : > { %p2603_p5 = pmov %p2601_p3 }
  0xa8   : > { %2037 = vsyncadd (%p2602_p4), [#allocation8], 4294966016 }
  0xa9   : > { %2039 = dma.done.wait (%p2603_p5), [#allocation11], 4096   ;;  %p2604_p9 = pmov %p2601_p3 }
  0xaa   : > { %s393_s27 = sand.u32 1, %s2164_s17   ;;  %s395_s11 = sand.u32 1, %s2064_s14  }
  0xab   : > { %2041 = vsyncadd (%p2604_p9), [#allocation11], 4294963200  ;;  %s1552_s1 = smul.u32 384, %s395_s11  ;;  %s394_s9 = scalar_lea.sflag [#allocation5], %s393_s27 }
  0xac   : > { %p2605_p10 = scmp.ne.s32.totalorder %s2585_s24, 0 }
  0xad   : > { %s2372_s12 = scalar_lea.vmem [#allocation12], %s1552_s1 }
  0xae   : > { %2043 = dma.done.wait (%p2605_p10), %s394_s9, 6144  }
  0xaf   : > { %2045 = vsyncadd (%p2605_p10), %s394_s9, 4294961152  ;;  %s1415_s30 = sshll.u32 %s395_s11, 4  ;;  %s1416_s20 = sshll.u32 %s2164_s17, 1 }
  0xb0   : > { %p440_p2 = scmp.lt.s32.totalorder %s1416_s20, 7  ;;  %s2385_s22 = scalar_lea.vmem [#allocation16], %s1415_s30 }
  0xb1   : > { %p2606_p0 = scmp.ne.s32.totalorder %s2164_s17, 0 }
  0xb2   : > { %s2630_s20 = smov (!%p440_p2, %s1416_s20), 7  ;;  %v1662_v0 = vld [vmem:[#allocation10 + $0x4] ss:$8 sps:$4 sm:$0xff] (!%p2606_p0)   ;;  %v1664_v1 = vld [vmem:[#allocation10] ss:$8 sps:$4 sm:$0xff] (!%p2606_p0)   ;;  %v2084_v2 = vmov (!%p2606_p0), 0.0   ;;  %v605_v55 = vlaneseq (!%p2606_p0) }
  0xb3   : > { %s442_s21 = scalar_lea.vmem %s2560_s7, %s2630_s20  ;;  %449 = sbr.rel (%p2606_p0) target bundleno = 463 (0x1cf), region = 76  ;;  %1531 = vmatprep.subr.bf16.mxu0 (!%p2606_p0), %v2084_v2  ;;  %vm2085_vm0 = vmmov (!%p2606_p0), 0   ;;  %775 = vmatprep.subr.bf16.mxu1 (!%p2606_p0), %v1662_v0  ;;  %v1665_v3 = vld [vmem:[#allocation10 + $0x14] ss:$8 sps:$4 sm:$0xff] (!%p2606_p0)   ;;  %v1667_v4 = vld [vmem:[#allocation10 + $0x10] ss:$8 sps:$4 sm:$0xff] (!%p2606_p0)  }
  0xb4   : > { %1547 = vmatprep.mubr.msk.bf16.mxu0 (!%p2606_p0), %vm2085_vm0, %v2084_v2  ;;  %776 = vmatpush1.bf16.msra.mxu1 (!%p2606_p0), %v1664_v1  ;;  %v1668_v5 = vld [vmem:[#allocation10 + $0x24] ss:$8 sps:$4 sm:$0xff] (!%p2606_p0)   ;;  %v1670_v6 = vld [vmem:[#allocation10 + $0x20] ss:$8 sps:$4 sm:$0xff] (!%p2606_p0)   ;;  %v1671_v7 = vld [vmem:[#allocation10 + $0x34] ss:$8 sps:$4 sm:$0xff] (!%p2606_p0)  }
  0xb5   : > { %777 = vmatprep.subr.bf16.mxu1 (!%p2606_p0), %v1665_v3  ;;  %v1673_v8 = vld [vmem:[#allocation10 + $0x30] ss:$8 sps:$4 sm:$0xff] (!%p2606_p0)   ;;  %v1686_v9 = vld [vmem:[#allocation9] sm:$0xff] (!%p2606_p0)   ;;  %v1690_v11 = vld [vmem:[#allocation9 + $0x8] sm:$0xff] (!%p2606_p0)   ;;  %v606_v56 = vshrl.u32 (!%p2606_p0), %v605_v55, 7 }
  0xb6   : > { %v1674_v10 = vld [vmem:[#allocation10 + $0x44] ss:$8 sps:$4 sm:$0xff] (!%p2606_p0)   ;;  %1532 = vmatpush3.bf16.msra.mxu0 (!%p2606_p0), %v1686_v9  ;;  %v1676_v12 = vld [vmem:[#allocation10 + $0x40] ss:$8 sps:$4 sm:$0xff] (!%p2606_p0)   ;;  %v1677_v13 = vld [vmem:[#allocation10 + $0x54] ss:$8 sps:$4 sm:$0xff] (!%p2606_p0)  }
  0xb7   : > { %1533 = vmatprep.subr.bf16.mxu0 (!%p2606_p0), %v2084_v2  ;;  %v1694_v14 = vld [vmem:[#allocation9 + $0x10] sm:$0xff] (!%p2606_p0)   ;;  %v1680_v16 = vld [vmem:[#allocation10 + $0x64] ss:$8 sps:$4 sm:$0xff] (!%p2606_p0)   ;;  %v1698_v17 = vld [vmem:[#allocation9 + $0x18] sm:$0xff] (!%p2606_p0)   ;;  %v607_v57 = vsub.s32 (!%p2606_p0), 0, %v606_v56  ;;  %v611_v59 = vsub.s32 (!%p2606_p0), 1, %v606_v56 }
  0xb8   : > { %778 = vmatpush1.bf16.msra.mxu1 (!%p2606_p0), %v1667_v4  ;;  %v1679_v15 = vld [vmem:[#allocation10 + $0x50] ss:$8 sps:$4 sm:$0xff] (!%p2606_p0)   ;;  %v1682_v18 = vld [vmem:[#allocation10 + $0x60] ss:$8 sps:$4 sm:$0xff] (!%p2606_p0)   ;;  %v1683_v19 = vld [vmem:[#allocation10 + $0x74] ss:$8 sps:$4 sm:$0xff] (!%p2606_p0)  }
  0xb9   : > { %779 = vmatprep.subr.bf16.mxu1 (!%p2606_p0), %v1668_v5  ;;  %v1702_v20 = vld [vmem:[#allocation9 + $0x20] sm:$0xff] (!%p2606_p0)   ;;  %v1685_v21 = vld [vmem:[#allocation10 + $0x70] ss:$8 sps:$4 sm:$0xff] (!%p2606_p0)   ;;  %v1706_v23 = vld [vmem:[#allocation9 + $0x28] sm:$0xff] (!%p2606_p0)  }
  0xba   : > { %1534 = vmatpush3.bf16.msra.mxu0 %v1690_v11  ;;  %v1687_v22 = vld [vmem:[#allocation10 + $0x84] ss:$8 sps:$4 sm:$0xff]   ;;  %v568_v24 = vld [vmem:[#allocation7 + $0x8] sm:$0xff]  ;;  %v1689_v26 = vld [vmem:[#allocation10 + $0x80] ss:$8 sps:$4 sm:$0xff]  }
  0xbb   : > { %1535 = vmatprep.subr.bf16.mxu0 %v2084_v2  ;;  %v570_v25 = vpack.c.bf16 %v568_v24, %v568_v24  ;;  %v1691_v27 = vld [vmem:[#allocation10 + $0x94] ss:$8 sps:$4 sm:$0xff]   ;;  %v1693_v29 = vld [vmem:[#allocation10 + $0x90] ss:$8 sps:$4 sm:$0xff]   ;;  %v1695_v30 = vld [vmem:[#allocation10 + $0xa4] ss:$8 sps:$4 sm:$0xff]  }
  0xbc   : > { %780 = vmatpush1.bf16.msra.mxu1 %v1670_v6  ;;  %v1710_v28 = vld [vmem:[#allocation9 + $0x30] sm:$0xff]   ;;  %v1714_v31 = vld [vmem:[#allocation9 + $0x38] sm:$0xff]   ;;  %v450_v32 = vld [vmem:[#allocation4] sm:$0xff] }
  0xbd   : > { %781 = vmatprep.subr.bf16.mxu1 %v1671_v7  ;;  %807 = vmatprep.mubr.bf16.mxu1 %v570_v25  ;;  %v1697_v33 = vld [vmem:[#allocation10 + $0xa0] ss:$8 sps:$4 sm:$0xff]   ;;  %v1699_v34 = vld [vmem:[#allocation10 + $0xb4] ss:$8 sps:$4 sm:$0xff]   ;;  %v451_v35 = vpack.c.bf16 %v450_v32, %v450_v32  ;;  %v1701_v36 = vld [vmem:[#allocation10 + $0xb0] ss:$8 sps:$4 sm:$0xff]  }
  0xbe   : > { %1536 = vmatpush3.bf16.msra.mxu0 %v1694_v14  ;;  %v1703_v37 = vld [vmem:[#allocation10 + $0xc4] ss:$8 sps:$4 sm:$0xff]   ;;  %v1705_v38 = vld [vmem:[#allocation10 + $0xc0] ss:$8 sps:$4 sm:$0xff]   ;;  %v1707_v39 = vld [vmem:[#allocation10 + $0xd4] ss:$8 sps:$4 sm:$0xff]  }
  0xbf   : > { %1537 = vmatprep.subr.bf16.mxu0 %v2084_v2  ;;  %v1709_v40 = vld [vmem:[#allocation10 + $0xd0] ss:$8 sps:$4 sm:$0xff]   ;;  %v1711_v41 = vld [vmem:[#allocation10 + $0xe4] ss:$8 sps:$4 sm:$0xff]   ;;  %v1713_v42 = vld [vmem:[#allocation10 + $0xe0] ss:$8 sps:$4 sm:$0xff]  }
  0xc0   : > { %782 = vmatpush1.bf16.msra.mxu1 %v1673_v8  ;;  %v1715_v43 = vld [vmem:[#allocation10 + $0xf4] ss:$8 sps:$4 sm:$0xff]   ;;  %v1717_v44 = vld [vmem:[#allocation10 + $0xf0] ss:$8 sps:$4 sm:$0xff]  }
  0xc1   : > { %783 = vmatprep.subr.bf16.mxu1 %v1674_v10  ;;  %v567_v45 = vld [vmem:[#allocation7] sm:$0xff]  ;;  %v1418_v47 = vld [vmem:[%s2556_s3] ss:$0 sm:$0xff] }
  0xc2   : > { %1538 = vmatpush3.bf16.msra.mxu0 %v1698_v17  ;;  %v569_v46 = vpack.c.bf16 %v567_v45, %v567_v45  ;;  %v603_v58 = vld [vmem:[%s2558_s5] sm:$0x3] }
  0xc3   : > { %1539 = vmatprep.subr.bf16.mxu0 %v2084_v2  ;;  %v608_v60 = vrot.slane %v603_v58, %v607_v57  ;;  %v612_v61 = vrot.slane %v603_v58, %v611_v59 }
  0xc4   : > { %784 = vmatpush1.bf16.msra.mxu1 %v1676_v12 }
  0xc5   : > { %785 = vmatprep.subr.bf16.mxu1 %v1677_v13 }
  0xc6   : > { %1540 = vmatpush3.bf16.msra.mxu0 %v1702_v20 }
  0xc7   : > { %1541 = vmatprep.subr.bf16.mxu0 %v2084_v2 }
  0xc8   : > { %786 = vmatpush1.bf16.msra.mxu1 %v1679_v15 }
  0xc9   : > { %787 = vmatprep.subr.bf16.mxu1 %v1680_v16 }
  0xca   : > { %1542 = vmatpush3.bf16.msra.mxu0 %v1706_v23 }
  0xcb   : > { %1543 = vmatprep.subr.bf16.mxu0 %v2084_v2 }
  0xcc   : > { %788 = vmatpush1.bf16.msra.mxu1 %v1682_v18 }
  0xcd   : > { %789 = vmatprep.subr.bf16.mxu1 %v1683_v19 }
  0xce   : > { %1544 = vmatpush3.bf16.msra.mxu0 %v1710_v28 }
  0xcf   : > { %1545 = vmatprep.subr.bf16.mxu0 %v2084_v2 }
  0xd0   : > { %790 = vmatpush1.bf16.msra.mxu1 %v1685_v21 }
  0xd1   : > { %791 = vmatprep.subr.bf16.mxu1 %v1687_v22 }
  0xd2   : > { %1546 = vmatpush3.bf16.msra.mxu0 %v1714_v31 }
  0xd4   : > { %792 = vmatpush1.bf16.msra.mxu1 %v1689_v26 }
  0xd5   : > { %793 = vmatprep.subr.bf16.mxu1 %v1691_v27  ;;  %1548 = vmatmul.mubr.bf16.vlgmr.msra.gmra.mrb[0].mxu0 %v451_v35 }
  0xd8   : > { %794 = vmatpush1.bf16.msra.mxu1 %v1693_v29 }
  0xd9   : > { %795 = vmatprep.subr.bf16.mxu1 %v1695_v30 }
  0xdc   : > { %796 = vmatpush1.bf16.msra.mxu1 %v1697_v33 }
  0xdd   : > { %797 = vmatprep.subr.bf16.mxu1 %v1699_v34 }
  0xe0   : > { %798 = vmatpush1.bf16.msra.mxu1 %v1701_v36 }
  0xe1   : > { %799 = vmatprep.subr.bf16.mxu1 %v1703_v37 }
  0xe4   : > { %800 = vmatpush1.bf16.msra.mxu1 %v1705_v38 }
  0xe5   : > { %801 = vmatprep.subr.bf16.mxu1 %v1707_v39 }
  0xe8   : > { %802 = vmatpush1.bf16.msra.mxu1 %v1709_v40 }
  0xe9   : > { %803 = vmatprep.subr.bf16.mxu1 %v1711_v41 }
  0xec   : > { %804 = vmatpush1.bf16.msra.mxu1 %v1713_v42 }
  0xed   : > { %805 = vmatprep.subr.bf16.mxu1 %v1715_v43 }
  0xf0   : > { %806 = vmatpush1.bf16.msra.mxu1 %v1717_v44 }
  0xf3   : > { %808 = vmatmul.mubr.bf16.vlgmr.msra.gmra.mrb[0].mxu1 %v569_v46 }
 0x1a8   : > { %v557_v48 = vpop.f32.mrb[0].mxu0 }
 0x1a9   : > { %v558_v49 = vadd.f32 %v1418_v47, %v557_v48  ;;  %v1549_v50 = vpop.f32.mrb[1].mxu0 }
 0x1aa   : > { %v560_v51 = vpop.f32.mrb[2].mxu0 }
 0x1ab   : > { %v563_v52 = vmax.f32 %v558_v49, 0.0  ;;  %v1550_v53 = vpop.f32.mrb[3].mxu0 }
 0x1ad   : > { %564 = vst [vmem:[#allocation13] sm:$0xff] %v563_v52  ;;  %v565_v54 = vpack.c.bf16 %v563_v52, %v563_v52 }
 0x1af   : > { %566 = vst [vmem:[#allocation2] sm:$0xf] %v565_v54 }
 0x1c6   : > { %v809_v62 = vpop.f32.mrb[0].mxu1 }
 0x1c7   : > { %v810_v63 = vadd.f32 %v809_v62, %v608_v60  ;;  %v811_v0 = vpop.f32.mrb[1].mxu1 }
 0x1c8   : > { %v812_v1 = vadd.f32 %v811_v0, %v612_v61  ;;  %v813_v2 = vpop.f32.mrb[2].mxu1 }
 0x1c9   : > { %v816_v3 = vmax.f32 %v810_v63, 0.0  ;;  %v814_v4 = vpop.f32.mrb[3].mxu1 }
 0x1ca   : > { %v817_v5 = vmax.f32 %v812_v1, 0.0 }
 0x1cb   : > { %818 = vst [vmem:[#allocation14] sm:$0xff] %v816_v3 }
 0x1cc   : > { %819 = vst [vmem:[#allocation14 + $0x8] sm:$0xff] %v817_v5  ;;  %v1520_v6 = vpack.c.bf16 %v817_v5, %v816_v3 }
 0x1ce   : > { %828 = vst [vmem:[#allocation3] sm:$0xff] %v1520_v6 }
 0x1cf PF: > { %v1718_v7 = vld [vmem:[%s2372_s12 + $0x84] ss:$8 sps:$4 sm:$0xff]   ;;  %v1720_v8 = vld [vmem:[%s2372_s12 + $0x80] ss:$8 sps:$4 sm:$0xff]   ;;  %v2086_v9 = vmov 0   ;;  %s2087_s28 = smov [#allocation13]  }
 0x1d0   : > { %1199 = vmatprep.mubr.bf16.mxu1 %v2086_v9  ;;  %1046 = vmatprep.subr.bf16.mxu0 %v1718_v7  ;;  %v1721_v10 = vld [vmem:[%s2372_s12 + $0x94] ss:$8 sps:$4 sm:$0xff]   ;;  %v1723_v11 = vld [vmem:[%s2372_s12 + $0x90] ss:$8 sps:$4 sm:$0xff]   ;;  %v1724_v12 = vld [vmem:[%s2372_s12 + $0xa4] ss:$8 sps:$4 sm:$0xff]  }
 0x1d1   : > { %1047 = vmatpush1.bf16.msra.mxu0 %v1720_v8  ;;  %v1726_v13 = vld [vmem:[%s2372_s12 + $0xa0] ss:$8 sps:$4 sm:$0xff]   ;;  %v1727_v14 = vld [vmem:[%s2372_s12 + $0xb4] ss:$8 sps:$4 sm:$0xff]   ;;  %v1729_v15 = vld [vmem:[%s2372_s12 + $0xb0] ss:$8 sps:$4 sm:$0xff]  }
 0x1d2   : > { %1048 = vmatprep.subr.bf16.mxu0 %v1721_v10  ;;  %v1742_v16 = vld [vmem:[%s2372_s12 + $0x4] ss:$8 sps:$4 sm:$0xff]   ;;  %v1744_v17 = vld [vmem:[%s2372_s12] ss:$8 sps:$4 sm:$0xff]   ;;  %v1748_v19 = vld [vmem:[%s2372_s12 + $0x14] ss:$8 sps:$4 sm:$0xff]  }
 0x1d3   : > { %v1730_v18 = vld [vmem:[%s2372_s12 + $0xc4] ss:$8 sps:$4 sm:$0xff]   ;;  %1167 = vmatprep.subr.bf16.mxu1 %v1742_v16  ;;  %v1750_v20 = vld [vmem:[%s2372_s12 + $0x10] ss:$8 sps:$4 sm:$0xff]   ;;  %v1732_v21 = vld [vmem:[%s2372_s12 + $0xc0] ss:$8 sps:$4 sm:$0xff]  }
 0x1d4   : > { %1168 = vmatpush1.bf16.msra.mxu1 %v1744_v17  ;;  %v1733_v22 = vld [vmem:[%s2372_s12 + $0xd4] ss:$8 sps:$4 sm:$0xff]   ;;  %v1754_v23 = vld [vmem:[%s2372_s12 + $0x24] ss:$8 sps:$4 sm:$0xff]   ;;  %v1756_v24 = vld [vmem:[%s2372_s12 + $0x20] ss:$8 sps:$4 sm:$0xff]  }
 0x1d5   : > { %1049 = vmatpush1.bf16.msra.mxu0 %v1723_v11  ;;  %1169 = vmatprep.subr.bf16.mxu1 %v1748_v19  ;;  %v1735_v25 = vld [vmem:[%s2372_s12 + $0xd0] ss:$8 sps:$4 sm:$0xff]   ;;  %v1760_v26 = vld [vmem:[%s2372_s12 + $0x34] ss:$8 sps:$4 sm:$0xff]   ;;  %v1736_v27 = vld [vmem:[%s2372_s12 + $0xe4] ss:$8 sps:$4 sm:$0xff]  }
 0x1d6   : > { %1050 = vmatprep.subr.bf16.mxu0 %v1724_v12  ;;  %v1762_v28 = vld [vmem:[%s2372_s12 + $0x30] ss:$8 sps:$4 sm:$0xff]   ;;  %v1738_v29 = vld [vmem:[%s2372_s12 + $0xe0] ss:$8 sps:$4 sm:$0xff]   ;;  %v1766_v30 = vld [vmem:[%s2372_s12 + $0x44] ss:$8 sps:$4 sm:$0xff]  }
 0x1d7   : > { %v1739_v31 = vld [vmem:[%s2372_s12 + $0xf4] ss:$8 sps:$4 sm:$0xff]   ;;  %v1768_v32 = vld [vmem:[%s2372_s12 + $0x40] ss:$8 sps:$4 sm:$0xff]   ;;  %v1741_v33 = vld [vmem:[%s2372_s12 + $0xf0] ss:$8 sps:$4 sm:$0xff]  }
 0x1d8   : > { %1170 = vmatpush1.bf16.msra.mxu1 %v1750_v20  ;;  %v1772_v34 = vld [vmem:[%s2372_s12 + $0x54] ss:$8 sps:$4 sm:$0xff]   ;;  %v1745_v35 = vld [vmem:[%s2372_s12 + $0x104] ss:$8 sps:$4 sm:$0xff]   ;;  %v1774_v36 = vld [vmem:[%s2372_s12 + $0x50] ss:$8 sps:$4 sm:$0xff]  }
 0x1d9   : > { %1051 = vmatpush1.bf16.msra.mxu0 %v1726_v13  ;;  %1171 = vmatprep.subr.bf16.mxu1 %v1754_v23  ;;  %v1747_v37 = vld [vmem:[%s2372_s12 + $0x100] ss:$8 sps:$4 sm:$0xff]   ;;  %v1778_v38 = vld [vmem:[%s2372_s12 + $0x64] ss:$8 sps:$4 sm:$0xff]   ;;  %v1751_v39 = vld [vmem:[%s2372_s12 + $0x114] ss:$8 sps:$4 sm:$0xff]  }
 0x1da   : > { %1052 = vmatprep.subr.bf16.mxu0 %v1727_v14  ;;  %v846_v40 = vld [vmem:[#allocation3] sm:$0xff]  ;;  %v1753_v43 = vld [vmem:[%s2372_s12 + $0x110] ss:$8 sps:$4 sm:$0xff]   ;;  %v1784_v44 = vld [vmem:[%s2372_s12 + $0x74] ss:$8 sps:$4 sm:$0xff]   ;;  %s1238_s26 = sshll.u32 %s2087_s28, 4  ;;  %s1239_s26 = int_to_ptr.vmem [resolvable:$true] %s1238_s26 }
 0x1db   : > { %v1461_v41 = vcombine.high %v846_v40, %v846_v40  ;;  %v1780_v42 = vld [vmem:[%s2372_s12 + $0x60] ss:$8 sps:$4 sm:$0xff]   ;;  %v1757_v45 = vld [vmem:[%s2372_s12 + $0x124] ss:$8 sps:$4 sm:$0xff]   ;;  %v1786_v46 = vld [vmem:[%s2372_s12 + $0x70] ss:$8 sps:$4 sm:$0xff]   ;;  %v1460_v59 = vcombine.low %v846_v40, %v846_v40  ;;  %p1941_p1 = scmp.lt.s32.totalorder %s1239_s26, %s1239_s26 }
 0x1dc   : > { %1172 = vmatpush1.bf16.msra.mxu1 %v1756_v24  ;;  %v1759_v47 = vld [vmem:[%s2372_s12 + $0x120] ss:$8 sps:$4 sm:$0xff]   ;;  %v1763_v48 = vld [vmem:[%s2372_s12 + $0x134] ss:$8 sps:$4 sm:$0xff]   ;;  %v1765_v50 = vld [vmem:[%s2372_s12 + $0x130] ss:$8 sps:$4 sm:$0xff]  }
 0x1dd   : > { %1053 = vmatpush1.bf16.msra.mxu0 %v1729_v15  ;;  %1173 = vmatprep.subr.bf16.mxu1 %v1760_v26  ;;  %v829_v49 = vld [vmem:[#allocation2] sm:$0xf]  ;;  %v1769_v51 = vld [vmem:[%s2372_s12 + $0x144] ss:$8 sps:$4 sm:$0xff]   ;;  %v1771_v52 = vld [vmem:[%s2372_s12 + $0x140] ss:$8 sps:$4 sm:$0xff]  }
 0x1de   : > { %1054 = vmatprep.subr.bf16.mxu0 %v1730_v18  ;;  %1078 = vmatprep.mubr.bf16.mxu0 %v1461_v41  ;;  %v1775_v53 = vld [vmem:[%s2372_s12 + $0x154] ss:$8 sps:$4 sm:$0xff]   ;;  %v1777_v54 = vld [vmem:[%s2372_s12 + $0x150] ss:$8 sps:$4 sm:$0xff]   ;;  %v1781_v55 = vld [vmem:[%s2372_s12 + $0x164] ss:$8 sps:$4 sm:$0xff]  }
 0x1df   : > { %v1783_v56 = vld [vmem:[%s2372_s12 + $0x160] ss:$8 sps:$4 sm:$0xff]   ;;  %v1787_v57 = vld [vmem:[%s2372_s12 + $0x174] ss:$8 sps:$4 sm:$0xff]   ;;  %v1789_v58 = vld [vmem:[%s2372_s12 + $0x170] ss:$8 sps:$4 sm:$0xff]  }
 0x1e0   : > { %1174 = vmatpush1.bf16.msra.mxu1 %v1762_v28  ;;  %s2088_s0 = smov [#allocation14]   ;;  %s1934_s19 = scalar_lea.vmem %s1239_s26, 128 }
 0x1e1   : > { %1055 = vmatpush1.bf16.msra.mxu0 %v1732_v21  ;;  %1175 = vmatprep.subr.bf16.mxu1 %v1766_v30  ;;  %s1249_s18 = sshll.u32 %s2088_s0, 4  ;;  %p1935_p7 = scmp.ne.s32.totalorder %s1239_s26, %s1934_s19  ;;  %s1250_s18 = int_to_ptr.vmem [resolvable:$true] %s1249_s18 }
 0x1e2   : > { %1056 = vmatprep.subr.bf16.mxu0 %v1733_v22  ;;  %p2607_p8 = scmp.eq.s32.totalorder %s2164_s17, 3  ;;  %p1942_p6 = scmp.lt.s32.totalorder %s1934_s19, %s1934_s19 }
 0x1e4   : > { %1176 = vmatpush1.bf16.msra.mxu1 %v1768_v32  ;;  %p1936_p11 = pnand %p1935_p7, %p2607_p8  ;;  %p1943_p13 = por %p1942_p6, %p1941_p1 }
 0x1e5   : > { %1057 = vmatpush1.bf16.msra.mxu0 %v1735_v25  ;;  %1177 = vmatprep.subr.bf16.mxu1 %v1772_v34 }
 0x1e6   : > { %1058 = vmatprep.subr.bf16.mxu0 %v1736_v27  ;;  %p1937_p12 = pneg %p1936_p11 }
 0x1e8   : > { %1178 = vmatpush1.bf16.msra.mxu1 %v1774_v36  ;;  %p1944_p3 = pnand %p1943_p13, %p1937_p12 }
 0x1e9   : > { %1059 = vmatpush1.bf16.msra.mxu0 %v1738_v29  ;;  %1179 = vmatprep.subr.bf16.mxu1 %v1778_v38 }
 0x1ea   : > { %1060 = vmatprep.subr.bf16.mxu0 %v1739_v31 }
 0x1ec   : > { %1180 = vmatpush1.bf16.msra.mxu1 %v1780_v42 }
 0x1ed   : > { %1061 = vmatpush1.bf16.msra.mxu0 %v1741_v33  ;;  %1181 = vmatprep.subr.bf16.mxu1 %v1784_v44 }
 0x1ee   : > { %1062 = vmatprep.subr.bf16.mxu0 %v1745_v35 }
 0x1f0   : > { %1182 = vmatpush1.bf16.msra.mxu1 %v1786_v46 }
 0x1f1   : > { %1063 = vmatpush1.bf16.msra.mxu0 %v1747_v37 }
 0x1f2   : > { %1064 = vmatprep.subr.bf16.mxu0 %v1751_v39 }
 0x1f3   : > { %1200 = vmatmul.mubr.bf16.vlgmr.msra.gmra.mrb[0].mxu1 %v829_v49 }
 0x1f5   : > { %1065 = vmatpush1.bf16.msra.mxu0 %v1753_v43 }
 0x1f6   : > { %1066 = vmatprep.subr.bf16.mxu0 %v1757_v45 }
 0x1f9   : > { %1067 = vmatpush1.bf16.msra.mxu0 %v1759_v47 }
 0x1fa   : > { %1068 = vmatprep.subr.bf16.mxu0 %v1763_v48 }
 0x1fd   : > { %1069 = vmatpush1.bf16.msra.mxu0 %v1765_v50 }
 0x1fe   : > { %1070 = vmatprep.subr.bf16.mxu0 %v1769_v51 }
 0x201   : > { %1071 = vmatpush1.bf16.msra.mxu0 %v1771_v52 }
 0x202   : > { %1072 = vmatprep.subr.bf16.mxu0 %v1775_v53 }
 0x205   : > { %1073 = vmatpush1.bf16.msra.mxu0 %v1777_v54 }
 0x206   : > { %1074 = vmatprep.subr.bf16.mxu0 %v1781_v55 }
 0x209   : > { %1075 = vmatpush1.bf16.msra.mxu0 %v1783_v56 }
 0x20a   : > { %1076 = vmatprep.subr.bf16.mxu0 %v1787_v57 }
 0x20d   : > { %1077 = vmatpush1.bf16.msra.mxu0 %v1789_v58 }
 0x210   : > { %1079 = vmatmul.mubr.bf16.vlgmr.msra.gmra.mrb[0].mxu0 %v1460_v59 }
 0x211   : > { %1947 = shalt.err (!%p1944_p3)
}
 0x212   : > { %s1948_s9 = scalar_lea.hbm %s2561_s8, 128  ;;  %p2608_p5 = pmov %p2607_p8 }
 0x213   : > { %p1949_p4 = scmp.ne.s32.totalorder %s2561_s8, %s1948_s9  ;;  %p1954_p2 = scmp.lt.u32.totalorder %s1948_s9, %s2561_s8 }
 0x215   : > { %p1950_p9 = pnand %p1949_p4, %p2608_p5 }
 0x217   : > { %p1951_p10 = pneg %p1950_p9 }
 0x219   : > { %p1956_p0 = pnand %p1954_p2, %p1951_p10 }
 0x21b   : > { %1959 = shalt.err (!%p1956_p0)
}
 0x21c   : > { %p2609_p7 = pmov %p2608_p5  ;;  %s1960_s23 = scalar_lea.vmem %s1250_s18, 256 }
 0x21d   : > { %p1961_p8 = scmp.ne.s32.totalorder %s1250_s18, %s1960_s23  ;;  %p2610_p11 = pmov %p2608_p5 }
 0x21e   : > { %1572 = dma.vmem_to_hbm [thread:$0]  (%p2609_p7), %s1239_s26, 128, %s2561_s8, [#allocation6]  }
 0x21f   : > { %p1962_p12 = pnand %p1961_p8, %p2610_p11  ;;  %p1967_p6 = scmp.lt.s32.totalorder %s1250_s18, %s1250_s18 }
 0x220   : > { %p1968_p13 = scmp.lt.s32.totalorder %s1960_s23, %s1960_s23 }
 0x221   : > { %p1963_p1 = pneg %p1962_p12 }
 0x222   : > { %p1969_p3 = por %p1968_p13, %p1967_p6 }
 0x224   : > { %p1970_p4 = pnand %p1969_p3, %p1963_p1 }
 0x226   : > { %1973 = shalt.err (!%p1970_p4)
}
 0x227   : > { %s2611_s0 = sld [smem:[#allocation30_spill]]  ;;  %p2612_p9 = pmov %p2609_p7 }
 0x22d   : > { %s1974_s19 = scalar_lea.hbm %s2611_s0, 256 }
 0x22e   : > { %p1975_p5 = scmp.ne.s32.totalorder %s2611_s0, %s1974_s19  ;;  %p1980_p0 = scmp.lt.u32.totalorder %s1974_s19, %s2611_s0 }
 0x230   : > { %p1976_p10 = pnand %p1975_p5, %p2612_p9 }
 0x232   : > { %p1977_p2 = pneg %p1976_p10 }
 0x234   : > { %p1982_p7 = pnand %p1980_p0, %p1977_p2 }
 0x236   : > { %1985 = shalt.err (!%p1982_p7)
}
 0x237   : > { %p2613_p8 = pmov %p2612_p9  ;;  %v1210_v0 = vlaneseq  ;;  %v1208_v3 = vld [vmem:[%s442_s21] sm:$0x3]  ;;  %s1521_s24 = sshll.u32 %s2164_s17, 8 }
 0x238   : > { %s1263_s25 = sshll.u32 %s2385_s22, 4  ;;  %s2615_s23 = sld [smem:[#allocation31_spill]]  ;;  %s2500_s25 = int_to_ptr.vmem [resolvable:$true] %s1263_s25 }
 0x239   : > { %1574 = dma.vmem_to_hbm [thread:$0]  (%p2613_p8), %s1250_s18, 256, %s2611_s0, [#allocation15]   ;;  %v1211_v1 = vshrl.u32 %v1210_v0, 7 }
 0x23a   : > { %s2614_s18 = sld [smem:[#allocation26_spill]]  ;;  %s1227_s28 = scalar_lea.sflag [#allocation6], %s393_s27 }
 0x23b   : > { %v1212_v2 = vsub.s32 0, %v1211_v1  ;;  %v1216_v4 = vsub.s32 1, %v1211_v1  ;;  %s1986_s19 = scalar_lea.vmem %s2500_s25, 256  ;;  %s2089_s11 = smov [#allocation16]  }
 0x23c   : > { %p1987_p11 = scmp.ne.s32.totalorder %s2500_s25, %s1986_s19  ;;  %s1990_s1 = sshll.u32 %s2089_s11, 4  ;;  %s1991_s1 = int_to_ptr.vmem [resolvable:$false] %s1990_s1 }
 0x23d   : > { %v1213_v5 = vrot.slane %v1208_v3, %v1212_v2  ;;  %v1217_v7 = vrot.slane %v1208_v3, %v1216_v4  ;;  %s1992_s26 = scalar_lea.vmem %s1991_s1, 512  ;;  %p1993_p13 = scmp.lt.s32.totalorder %s2500_s25, %s1991_s1 }
 0x23e   : > { %s2498_s10 = scalar_lea.hbm %s2615_s23, %s1521_s24  ;;  %p1994_p3 = scmp.lt.s32.totalorder %s1992_s26, %s1986_s19 }
 0x240   : > { %p2616_p12 = scmp.ne.s32.totalorder %s2614_s18, 0  ;;  %p1995_p4 = por %p1994_p3, %p1993_p13 }
 0x242   : > { %p1988_p1 = pnand %p1987_p11, %p2616_p12 }
 0x244   : > { %p1989_p6 = pneg %p1988_p1 }
 0x246   : > { %p1996_p5 = pnand %p1995_p4, %p1989_p6 }
 0x2c6   : > { %v1201_v60 = vpop.f32.mrb[0].mxu1 }
 0x2c7   : > { %v1203_v61 = vpop.f32.mrb[1].mxu1 }
 0x2c8   : > { %v1205_v62 = vpop.f32.mrb[2].mxu1 }
 0x2c9   : > { %v1206_v63 = vpop.f32.mrb[3].mxu1 }
 0x2e3   : > { %v1080_v6 = vpop.f32.mrb[0].mxu0 }
 0x2e4   : > { %v1202_v8 = vadd.f32 %v1201_v60, %v1080_v6  ;;  %v1082_v9 = vpop.f32.mrb[1].mxu0 }
 0x2e5   : > { %v1204_v10 = vadd.f32 %v1203_v61, %v1082_v9  ;;  %v1084_v11 = vpop.f32.mrb[2].mxu0 }
 0x2e6   : > { %v1220_v12 = vadd.f32 %v1213_v5, %v1202_v8  ;;  %v1085_v13 = vpop.f32.mrb[3].mxu0 }
 0x2e7   : > { %v1221_v14 = vadd.f32 %v1217_v7, %v1204_v10 }
 0x2e8   : > { %v1222_v15 = vmax.f32 %v1220_v12, 0.0 }
 0x2e9   : > { %v1223_v16 = vmax.f32 %v1221_v14, 0.0 }
 0x2ea   : > { %1224 = vst [vmem:[%s2385_s22] sm:$0xff] %v1222_v15 }
 0x2eb   : > { %1225 = vst [vmem:[%s2385_s22 + $0x8] sm:$0xff] %v1223_v16 }
 0x2ec   : > { %1999 = shalt.err (!%p1996_p5)
}
 0x2ed   : > { %s2000_s27 = scalar_lea.hbm %s2498_s10, 256  ;;  %s2004_s12 = scalar_lea.hbm %s2615_s23, 1024 }
 0x2ee   : > { %p2001_p9 = scmp.ne.s32.totalorder %s2498_s10, %s2000_s27  ;;  %p2005_p0 = scmp.lt.u32.totalorder %s2498_s10, %s2615_s23 }
 0x2ef   : > { %p2006_p7 = scmp.lt.u32.totalorder %s2004_s12, %s2000_s27  ;;  %p2008_p11 = scmp.lt.u32.totalorder %s2000_s27, %s2498_s10 }
 0x2f0   : > { %p2002_p10 = pnand %p2001_p9, %p2616_p12 }
 0x2f1   : > { %p2007_p8 = por %p2006_p7, %p2005_p0 }
 0x2f2   : > { %p2003_p2 = pneg %p2002_p10 }
 0x2f3   : > { %p2009_p1 = por %p2008_p11, %p2007_p8 }
 0x2f5   : > { %p2010_p6 = pnand %p2009_p1, %p2003_p2 }
 0x2f7   : > { %2013 = shalt.err (!%p2010_p6)
}
 0x2f8   : > { %1575 = dma.vmem_to_hbm [thread:$0]  (%p2616_p12), %s2500_s25, 256, %s2498_s10, %s1227_s28  }
 0x2f9   : > { %p2617_p13 = scmp.eq.s32.totalorder %s2164_s17, 3 }
 0x2fb   : > { %2047 = dma.done.wait (%p2617_p13), [#allocation6], 128   ;;  %p2618_p3 = pmov %p2617_p13 }
 0x2fd   : > { %2049 = vsyncadd (%p2618_p3), [#allocation6], 4294967168  ;;  %p2619_p4 = pmov %p2618_p3 }
 0x2fe   : > { %p2620_p5 = pmov %p2618_p3 }
 0x2ff   : > { %2051 = dma.done.wait (%p2619_p4), [#allocation15], 256  }
 0x300   : > { %2053 = vsyncadd (%p2620_p5), [#allocation15], 4294967040 }
 0x301 PF: > { %s2621_s13 = sld [smem:[#allocation27_spill]]  ;;  %p1615_p9 = scmp.ge.s32.totalorder %s2072_s16, 2 }
 0x302   : > { %s2622_s18 = sadd.s32 4294967294, %s2072_s16  }
 0x303   : > { %s1283_s24 = sand.u32 1, %s2622_s18  }
 0x304   : > { %s1284_s25 = scalar_lea.sflag [#allocation6], %s1283_s24 }
 0x307   : > { %p2623_p10 = scmp.ne.s32.totalorder %s2621_s13, 0 }
 0x309   : > { %p1599_p12 = pnand %p1615_p9, %p2623_p10 }
 0x30b   : > { %2055 = dma.done.wait (!%p1599_p12), %s1284_s25, 256  }
 0x30c   : > { %2057 = vsyncadd (!%p1599_p12), %s1284_s25, 4294967040  ;;  %s2624_s16 = sld [smem:[#allocation24_spill]]  ;;  %s2625_s20 = sld [smem:[#allocation25_spill]] }
 0x30d   : > { %s2626_s13 = smov %s2064_s14  ;;  %s2627_s14 = smov %s2068_s15 }
 0x312   : > { %p23_p2 = scmp.ge.s32.totalorder %s2624_s16, 6   ;;  %s2628_s15 = smov %s2625_s20 }
 0x314   :  { %25 = sbr.rel (!%p23_p2) target bundleno = 11 (0xb), region = 134 }
 0x31b   :  { %1289 = vsyncpa [#allocation5], 1 }
 0x31c   :  { %1291 = vsyncpa [#allocation5 + $0x1], 1 }
 0x31d   :  { %1292 = vsyncpa [#allocation8], 1 }
 0x31e   :  { %1293 = vsyncpa [#allocation11], 1 }
 0x31f   :  { %1294 = vsyncpa [#allocation6], 1 }
 0x320   :  { %1296 = vsyncpa [#allocation6 + $0x1], 1 }
 0x321   :  { %1297 = vsyncpa [#allocation15], 1 }

</bundles_post_ra>
